<compile_context>
chip_gen: v5e
topology: v5e:2x2
jax: 0.10.0
libtpu: 0.0.40
codegen_flags: <defaults>
</compile_context>

<pallas_src>
import functools

import jax
import jax.numpy as jnp
from jax.experimental import pallas as pl
from jax.experimental.pallas import tpu as pltpu


# ----------------------------------------------------------------------------
# Chip-aware VMEM budget
# ----------------------------------------------------------------------------
def _vmem_limit_bytes():
    try:
        cap = int(getattr(pltpu.get_tpu_info(), "vmem_capacity_bytes", 64 << 20))
    except Exception:
        cap = 64 << 20
    # ~75% of physical VMEM: ~96 MiB on v5e/v6e (128 MiB), ~48 MiB on v7x (64 MiB).
    return min((cap * 3) // 4, 100 << 20)


def _pick_tiles(B, C, feat_itemsize, budget):
    """Pick (tm, tn) feature tiles.

    tn: 256 (MXU-native N on v6e/v7x) or 128 so the matmul N stays lane-dense.
    tm: as large as possible -- the row block's index_map is constant across j
        so it is fetched once per row tile and reused for every column tile --
        but keep >= 2 row blocks when B allows it so the 'parallel' i axis can
        shard across both TensorCores on v7x.  The budget accounts for the 2x
        pipeline buffers of both bf16 feature operands plus the f32 similarity
        tile and its masked/working copies.
    """
    def fits(tm_, tn_):
        feat_bytes = 2 * (tm_ + tn_) * C * feat_itemsize   # double-buffered inputs
        tile_bytes = 4 * tm_ * tn_ * 4                      # sim + masked + work temps
        return feat_bytes + tile_bytes <= budget

    tn = next((t for t in (256, 128) if B % t == 0), B)
    cands = [t for t in (2048, 1024, 512, 256, 128) if B % t == 0]
    tm = B
    for t in cands:
        if (B // t >= 2 or B <= 128) and fits(t, tn):
            tm = t
            break
    else:
        if cands:
            tm = cands[-1]   # smallest 128-aligned tile, best effort
    # TODO(synk): pad B to a multiple of 128 (256 on v6e/v7x) for unaligned
    # production batch sizes instead of falling back to a single (B, B) block.
    return tm, tn


# ----------------------------------------------------------------------------
# Fused kernel: cosine-sim tile -> classwise masks -> streaming top-k ->
# MultiLabelCrossEntropyLoss (reduction=False) tail.
# ----------------------------------------------------------------------------
def _cl_loss_kernel(fr_ref, fc_ref, lab_r_ref, lab_c_ref, loss_ref,
                    topp_ref, topn_ref, *, inv_temp, k_pos, k_neg):
    j = pl.program_id(1)

    @pl.when(j == 0)
    def _():
        topp_ref[...] = jnp.full_like(topp_ref, jnp.inf)
        topn_ref[...] = jnp.full_like(topn_ref, -jnp.inf)

    # (tm, tn) cosine-similarity tile: features are already L2-normalized and
    # bf16 (wrapper); last-axis contraction -> no transpose, f32 accumulation.
    sim = jax.lax.dot_general(fr_ref[...], fc_ref[...],
                              (((1,), (1,)), ((), ())),
                              preferred_element_type=jnp.float32)

    same = lab_r_ref[...] == lab_c_ref[...]              # (tm, 1) == (1, tn)
    sim_pos = jnp.where(same, sim, jnp.inf)              # get_topk_pos: mask==0 -> +inf
    sim_neg = jnp.where(same, -jnp.inf, sim)             # get_topk_neg: mask==1 -> -inf

    # Streaming top-k merge (k small): concat the running best with the masked
    # tile and peel k extrema via iterative (min|max) + first-occurrence
    # masking, so duplicate values behave exactly like torch.topk.
    def _peel(buf, tile, k, largest):
        work = jnp.concatenate([buf, tile], axis=1)
        width = work.shape[1]
        iota = jax.lax.broadcasted_iota(jnp.int32, work.shape, 1)
        drop = -jnp.inf if largest else jnp.inf
        reduce = jnp.max if largest else jnp.min
        picks = []
        for _ in range(k):
            m = reduce(work, axis=1, keepdims=True)
            first = jnp.min(jnp.where(work == m, iota, width), axis=1, keepdims=True)
            work = jnp.where(iota == first, drop, work)
            picks.append(m)
        return jnp.concatenate(picks, axis=1)

    topp_ref[...] = _peel(topp_ref[...], sim_pos, k_pos, largest=False)
    topn_ref[...] = _peel(topn_ref[...], sim_neg, k_neg, largest=True)

    # Last column tile: fused MultiLabelCrossEntropyLoss (reduction=False) with
    # a shared-negative log-sum-exp; per-sample mean written lane-resident.
    @pl.when(j == pl.num_programs(1) - 1)
    def _():
        pos = topp_ref[...] * inv_temp                    # (tm, k_pos)
        neg = topn_ref[...] * inv_temp                    # (tm, k_neg)
        pos = jnp.where(pos == jnp.inf, -jnp.inf, pos)    # input[input == inf] = -inf
        m_neg = jnp.max(neg, axis=1, keepdims=True)
        m_neg = jnp.where(jnp.isfinite(m_neg), m_neg, 0.0)   # all -inf -> safe 0
        s_neg = jnp.sum(jnp.exp(neg - m_neg), axis=1, keepdims=True)
        m_row = jnp.maximum(pos, m_neg)
        lse = m_row + jnp.log(jnp.exp(pos - m_row) + s_neg * jnp.exp(m_neg - m_row))
        raw = lse - pos            # == -log_softmax at the one-hot target index
        # loss_[loss_ == +-inf] = 0 ; loss_[isnan] = 0
        raw = jnp.where(jnp.isnan(raw) | jnp.isinf(raw), 0.0, raw)
        # loss.reshape(B, -1).mean(1)
        loss_ref[...] = jnp.sum(raw, axis=1, keepdims=True) * (1.0 / k_pos)


def _cl_loss_fused(feat, labels, *, k_pos, k_neg, temp, use_bf16=True):
    B, C = feat.shape
    # Pre-normalize once in f32 (F.normalize eps=1e-12 semantics, EUP rsqrt) and
    # pre-cast to bf16 so the kernel streams half the bytes and does no per-tile
    # normalization work.
    f32 = feat.astype(jnp.float32)
    inv_nrm = jax.lax.rsqrt(
        jnp.maximum(jnp.sum(f32 * f32, axis=1, keepdims=True), 1e-24))
    feat_n = f32 * inv_nrm
    if use_bf16:
        feat_n = feat_n.astype(jnp.bfloat16)   # f32 path available for validation

    lab = labels.astype(jnp.int32)
    lab_col = lab.reshape(B, 1)
    lab_row = lab.reshape(1, B)

    budget = _vmem_limit_bytes()
    tm, tn = _pick_tiles(B, C, feat_n.dtype.itemsize, budget)
    grid = (B // tm, B // tn)

    cost = pl.CostEstimate(
        flops=2 * B * B * C,
        transcendentals=2 * B * (k_pos + k_neg + 2),
        bytes_accessed=(B // tm) * B * C * feat_n.dtype.itemsize   # col re-stream
        + B * C * feat_n.dtype.itemsize                            # row blocks
        + 2 * B * 4)                                               # labels + loss

    kern = functools.partial(_cl_loss_kernel, inv_temp=float(1.0 / temp),
                             k_pos=int(k_pos), k_neg=int(k_neg))

    loss = pl.pallas_call(
        kern,
        grid=grid,
        in_specs=[
            pl.BlockSpec((tm, C), lambda i, j: (i, 0)),   # row features (reused over j)
            pl.BlockSpec((tn, C), lambda i, j: (j, 0)),   # col features (streamed)
            pl.BlockSpec((tm, 1), lambda i, j: (i, 0)),   # row labels
            pl.BlockSpec((1, tn), lambda i, j: (0, j)),   # col labels
        ],
        out_specs=pl.BlockSpec((tm, 1), lambda i, j: (i, 0)),
        out_shape=jax.ShapeDtypeStruct((B, 1), jnp.float32),
        scratch_shapes=[pltpu.VMEM((tm, k_pos), jnp.float32),
                        pltpu.VMEM((tm, k_neg), jnp.float32)],
        compiler_params=pltpu.CompilerParams(
            dimension_semantics=("parallel", "arbitrary"),
            vmem_limit_bytes=budget),
        cost_estimate=cost,
    )(feat_n, feat_n, lab_col, lab_row)
    return loss.reshape(B)


# ----------------------------------------------------------------------------
# CLLoss wrapper
# ----------------------------------------------------------------------------
class CLLossPallas:
    """CLLoss with pair.pos == pair.neg == 'nn' (the only pair type the
    reference forward computes), supervised loss_type, default sampling,
    beta=None, reduction=False (per-sample loss -- the only shape-consistent
    reduction choice of the reference forward for B > 1)."""

    def __init__(self, pair, topk_pos=-1, topk_neg=-1, temp=1.0, loss_type=None,
                 beta=None, threshold=1, use_bf16=True):
        self.pair = pair
        self.topk_pos = pair.get('topk_pos') or topk_pos
        self.topk_neg = pair.get('topk_neg') or topk_neg
        self.temp = pair.get('temp') or temp
        self.loss_type = pair.get('loss_type') or loss_type
        self.beta = pair.get('beta') or beta
        self.threshold = pair.get('threshold') or threshold
        self.use_bf16 = use_bf16   # set False for an f32-MXU validation path
        assert self.pair['pos'] == 'nn' and self.pair['neg'] == 'nn'
        assert 'unsupervised' not in (self.loss_type or '')
        assert self.beta is None  # TODO(synk): beta reweighting (log(w)/temp) not exercised.

    @staticmethod
    def _squeeze(x):
        if x.ndim > 2:
            assert x.shape[-1] == 1 and x.shape[-2] == 1
            x = x.reshape(x.shape[0], x.shape[1])
        return x

    def __call__(self, old_feat, new_feat, target):
        old_feat = self._squeeze(old_feat)   # unused for 'nn'-only pairs (as in reference)
        new_feat = self._squeeze(new_feat)
        B, _ = new_feat.shape
        k_pos = min(self.topk_pos, B)
        k_neg = min(self.topk_neg, B)
        return _cl_loss_fused(new_feat, target, k_pos=k_pos, k_neg=k_neg,
                              temp=self.temp, use_bf16=self.use_bf16)


# ----------------------------------------------------------------------------
# Pure-JAX reference (f32, HIGHEST precision) for a sanity check
# ----------------------------------------------------------------------------
def _reference_loss(new_feat, target, topk_pos, topk_neg, temp):
    B, _ = new_feat.shape
    f = new_feat / jnp.maximum(jnp.linalg.norm(new_feat, axis=1, keepdims=True), 1e-12)
    sim = jnp.dot(f, f.T, precision=jax.lax.Precision.HIGHEST)
    same = target[:, None] == target[None, :]
    sim_pos = jnp.where(same, sim, jnp.inf)
    sim_neg = jnp.where(same, -jnp.inf, sim)
    pos = -jax.lax.top_k(-sim_pos, min(topk_pos, B))[0]
    neg = jax.lax.top_k(sim_neg, min(topk_neg, B))[0]
    pa = jnp.concatenate(
        [pos[:, :, None],
         jnp.broadcast_to(neg[:, None, :], (B, pos.shape[1], neg.shape[1]))], axis=2)
    x = pa / temp
    x = jnp.where(x == jnp.inf, -jnp.inf, x)
    lse = jax.scipy.special.logsumexp(x, axis=2, keepdims=True)
    logp = x - lse
    t = jnp.zeros_like(x).at[:, :, 0].set(1.0)
    l = -t * logp
    l = jnp.where(jnp.isnan(l) | jnp.isinf(l), 0.0, l)
    return l.sum(axis=2).mean(axis=1)


if __name__ == "__main__":
    key = jax.random.PRNGKey(0)
    k_old, k_new = jax.random.split(key)

    B, C = 8, 32
    old_feat = jax.random.normal(k_old, (B, C, 1, 1), dtype=jnp.float32)
    new_feat = jax.random.normal(k_new, (B, C, 1, 1), dtype=jnp.float32)
    target = jnp.array([0, 0, 1, 1, 2, 2, 3, 3], dtype=jnp.int32)

    pair = {'pos': 'nn', 'neg': 'nn', 'topk_pos': 2, 'topk_neg': 4,
            'temp': 0.5, 'loss_type': 'supervised'}
    loss_fn = CLLossPallas(pair)

    loss = loss_fn(old_feat, new_feat, target)
    loss = jax.block_until_ready(loss)

    ref = _reference_loss(new_feat.reshape(B, C), target,
                          pair['topk_pos'], pair['topk_neg'], pair['temp'])
    assert loss.shape == (B,)
    assert bool(jnp.all(jnp.isfinite(loss)))
    # bf16-MXU similarities (f32 accumulate) vs f32-HIGHEST reference: 2e-2.
    assert bool(jnp.allclose(loss, ref, rtol=2e-2, atol=2e-2))

    print("KERNEL_OK")
</pallas_src>

<mosaic_0001>
module attributes {stable_mosaic.version = 11 : i64} {
  func.func @_cl_loss_kernel(%arg0: i32, %arg1: i32, %arg2: memref<8x32xbf16, #tpu.memory_space<vmem>>, %arg3: memref<8x32xbf16, #tpu.memory_space<vmem>>, %arg4: memref<8x1xi32, #tpu.memory_space<vmem>>, %arg5: memref<1x8xi32, #tpu.memory_space<vmem>>, %arg6: memref<8x1xf32, #tpu.memory_space<vmem>>, %arg7: memref<8x2xf32, #tpu.memory_space<vmem>>, %arg8: memref<8x4xf32, #tpu.memory_space<vmem>>) attributes {dimension_semantics = [#tpu.dimension_semantics<parallel>, #tpu.dimension_semantics<arbitrary>], iteration_bounds = array<i64: 1, 1>, scalar_prefetch = 0 : i64, scratch_operands = 2 : i64, tpu.core_type = #tpu.core_type<tc>, window_params = [{transform_indices = @transform_0, window_bounds = array<i64: 8, 32>}, {transform_indices = @transform_1, window_bounds = array<i64: 8, 32>}, {transform_indices = @transform_2, window_bounds = array<i64: 8, 1>}, {transform_indices = @transform_3, window_bounds = array<i64: 1, 8>}, {transform_indices = @transform_4, window_bounds = array<i64: 8, 1>}]} {
    %c0_i32 = arith.constant 0 : i32
    %0 = arith.cmpi eq, %arg1, %c0_i32 : i32
    %1 = arith.extui %0 : i1 to i32
    %c0_i32_0 = arith.constant 0 : i32
    %2 = arith.cmpi ne, %1, %c0_i32_0 : i32
    scf.if %2 {
      %cst_36 = arith.constant 0x7F800000 : f32
      %80 = vector.broadcast %cst_36 : f32 to vector<8x2xf32>
      %c0_37 = arith.constant 0 : index
      %c0_38 = arith.constant 0 : index
      %81 = vector.load %arg7[%c0_37, %c0_38] : memref<8x2xf32, #tpu.memory_space<vmem>>, vector<8x2xf32>
      tpu.vector_store %arg7[%c0_37, %c0_38], %80 {strides = array<i32>} : memref<8x2xf32, #tpu.memory_space<vmem>>, vector<8x2xf32>,
      %cst_39 = arith.constant 0xFF800000 : f32
      %82 = vector.broadcast %cst_39 : f32 to vector<8x4xf32>
      %c0_40 = arith.constant 0 : index
      %c0_41 = arith.constant 0 : index
      %83 = vector.load %arg8[%c0_40, %c0_41] : memref<8x4xf32, #tpu.memory_space<vmem>>, vector<8x4xf32>
      tpu.vector_store %arg8[%c0_40, %c0_41], %82 {strides = array<i32>} : memref<8x4xf32, #tpu.memory_space<vmem>>, vector<8x4xf32>,
    } else {
    }
    %c0 = arith.constant 0 : index
    %c0_1 = arith.constant 0 : index
    %3 = vector.load %arg2[%c0, %c0_1] : memref<8x32xbf16, #tpu.memory_space<vmem>>, vector<8x32xbf16>
    %c0_2 = arith.constant 0 : index
    %c0_3 = arith.constant 0 : index
    %4 = vector.load %arg3[%c0_2, %c0_3] : memref<8x32xbf16, #tpu.memory_space<vmem>>, vector<8x32xbf16>
    %cst = arith.constant dense<0.000000e+00> : vector<8x8xf32>
    %5 = tpu.matmul %3, %4, %cst {dimension_numbers = #tpu.dot_dimension_numbers<[1], [1], [0], [0], [0, 0, 1, 0], [], []>} : vector<8x32xbf16>, vector<8x32xbf16>, vector<8x8xf32> -> vector<8x8xf32>
    %c0_4 = arith.constant 0 : index
    %c0_5 = arith.constant 0 : index
    %6 = vector.load %arg4[%c0_4, %c0_5] : memref<8x1xi32, #tpu.memory_space<vmem>>, vector<8x1xi32>
    %c0_6 = arith.constant 0 : index
    %c0_7 = arith.constant 0 : index
    %7 = vector.load %arg5[%c0_6, %c0_7] : memref<1x8xi32, #tpu.memory_space<vmem>>, vector<1x8xi32>
    %8 = vector.broadcast %6 : vector<8x1xi32> to vector<8x8xi32>
    %9 = vector.broadcast %7 : vector<1x8xi32> to vector<8x8xi32>
    %10 = arith.cmpi eq, %8, %9 : vector<8x8xi32>
    %cst_8 = arith.constant 0x7F800000 : f32
    %11 = vector.broadcast %cst_8 : f32 to vector<8x8xf32>
    %12 = arith.select %10, %5, %11 : vector<8x8xi1>, vector<8x8xf32>
    %cst_9 = arith.constant 0xFF800000 : f32
    %13 = vector.broadcast %cst_9 : f32 to vector<8x8xf32>
    %14 = arith.select %10, %13, %5 : vector<8x8xi1>, vector<8x8xf32>
    %c0_10 = arith.constant 0 : index
    %c0_11 = arith.constant 0 : index
    %15 = vector.load %arg7[%c0_10, %c0_11] : memref<8x2xf32, #tpu.memory_space<vmem>>, vector<8x2xf32>
    %16 = tpu.concatenate %15, %12 in 1 : vector<8x2xf32>, vector<8x8xf32> -> vector<8x10xf32>
    %17 = tpu.iota {dimensions = array<i32: 1>} : vector<8x10xi32>
    %cst_12 = arith.constant dense<0x7F800000> : vector<8xf32>
    %18 = vector.multi_reduction <minimumf>, %16, %cst_12 [1] : vector<8x10xf32> to vector<8xf32>
    %19 = vector.shape_cast %18 : vector<8xf32> to vector<8x1xf32>
    %20 = vector.broadcast %19 : vector<8x1xf32> to vector<8x10xf32>
    %21 = arith.cmpf oeq, %16, %20 : vector<8x10xf32>
    %c10_i32 = arith.constant 10 : i32
    %22 = vector.broadcast %c10_i32 : i32 to vector<8x10xi32>
    %23 = arith.select %21, %17, %22 : vector<8x10xi1>, vector<8x10xi32>
    %cst_13 = arith.constant dense<2147483647> : vector<8xi32>
    %24 = vector.multi_reduction <minsi>, %23, %cst_13 [1] : vector<8x10xi32> to vector<8xi32>
    %25 = vector.shape_cast %24 : vector<8xi32> to vector<8x1xi32>
    %26 = vector.broadcast %25 : vector<8x1xi32> to vector<8x10xi32>
    %27 = arith.cmpi eq, %17, %26 : vector<8x10xi32>
    %cst_14 = arith.constant 0x7F800000 : f32
    %28 = vector.broadcast %cst_14 : f32 to vector<8x10xf32>
    %29 = arith.select %27, %28, %16 : vector<8x10xi1>, vector<8x10xf32>
    %cst_15 = arith.constant dense<0x7F800000> : vector<8xf32>
    %30 = vector.multi_reduction <minimumf>, %29, %cst_15 [1] : vector<8x10xf32> to vector<8xf32>
    %31 = vector.shape_cast %30 : vector<8xf32> to vector<8x1xf32>
    %32 = tpu.concatenate %19, %31 in 1 : vector<8x1xf32>, vector<8x1xf32> -> vector<8x2xf32>
    %c0_16 = arith.constant 0 : index
    %c0_17 = arith.constant 0 : index
    %33 = vector.load %arg7[%c0_16, %c0_17] : memref<8x2xf32, #tpu.memory_space<vmem>>, vector<8x2xf32>
    tpu.vector_store %arg7[%c0_16, %c0_17], %32 {strides = array<i32>} : memref<8x2xf32, #tpu.memory_space<vmem>>, vector<8x2xf32>,
    %c0_18 = arith.constant 0 : index
    %c0_19 = arith.constant 0 : index
    %34 = vector.load %arg8[%c0_18, %c0_19] : memref<8x4xf32, #tpu.memory_space<vmem>>, vector<8x4xf32>
    %35 = tpu.concatenate %34, %14 in 1 : vector<8x4xf32>, vector<8x8xf32> -> vector<8x12xf32>
    %36 = tpu.iota {dimensions = array<i32: 1>} : vector<8x12xi32>
    %cst_20 = arith.constant dense<0xFF800000> : vector<8xf32>
    %37 = vector.multi_reduction <maximumf>, %35, %cst_20 [1] : vector<8x12xf32> to vector<8xf32>
    %38 = vector.shape_cast %37 : vector<8xf32> to vector<8x1xf32>
    %39 = vector.broadcast %38 : vector<8x1xf32> to vector<8x12xf32>
    %40 = arith.cmpf oeq, %35, %39 : vector<8x12xf32>
    %c12_i32 = arith.constant 12 : i32
    %41 = vector.broadcast %c12_i32 : i32 to vector<8x12xi32>
    %42 = arith.select %40, %36, %41 : vector<8x12xi1>, vector<8x12xi32>
    %cst_21 = arith.constant dense<2147483647> : vector<8xi32>
    %43 = vector.multi_reduction <minsi>, %42, %cst_21 [1] : vector<8x12xi32> to vector<8xi32>
    %44 = vector.shape_cast %43 : vector<8xi32> to vector<8x1xi32>
    %45 = vector.broadcast %44 : vector<8x1xi32> to vector<8x12xi32>
    %46 = arith.cmpi eq, %36, %45 : vector<8x12xi32>
    %cst_22 = arith.constant 0xFF800000 : f32
    %47 = vector.broadcast %cst_22 : f32 to vector<8x12xf32>
    %48 = arith.select %46, %47, %35 : vector<8x12xi1>, vector<8x12xf32>
    %cst_23 = arith.constant dense<0xFF800000> : vector<8xf32>
    %49 = vector.multi_reduction <maximumf>, %48, %cst_23 [1] : vector<8x12xf32> to vector<8xf32>
    %50 = vector.shape_cast %49 : vector<8xf32> to vector<8x1xf32>
    %51 = vector.broadcast %50 : vector<8x1xf32> to vector<8x12xf32>
    %52 = arith.cmpf oeq, %48, %51 : vector<8x12xf32>
    %c12_i32_24 = arith.constant 12 : i32
    %53 = vector.broadcast %c12_i32_24 : i32 to vector<8x12xi32>
    %54 = arith.select %52, %36, %53 : vector<8x12xi1>, vector<8x12xi32>
    %cst_25 = arith.constant dense<2147483647> : vector<8xi32>
    %55 = vector.multi_reduction <minsi>, %54, %cst_25 [1] : vector<8x12xi32> to vector<8xi32>
    %56 = vector.shape_cast %55 : vector<8xi32> to vector<8x1xi32>
    %57 = vector.broadcast %56 : vector<8x1xi32> to vector<8x12xi32>
    %58 = arith.cmpi eq, %36, %57 : vector<8x12xi32>
    %cst_26 = arith.constant 0xFF800000 : f32
    %59 = vector.broadcast %cst_26 : f32 to vector<8x12xf32>
    %60 = arith.select %58, %59, %48 : vector<8x12xi1>, vector<8x12xf32>
    %cst_27 = arith.constant dense<0xFF800000> : vector<8xf32>
    %61 = vector.multi_reduction <maximumf>, %60, %cst_27 [1] : vector<8x12xf32> to vector<8xf32>
    %62 = vector.shape_cast %61 : vector<8xf32> to vector<8x1xf32>
    %63 = vector.broadcast %62 : vector<8x1xf32> to vector<8x12xf32>
    %64 = arith.cmpf oeq, %60, %63 : vector<8x12xf32>
    %c12_i32_28 = arith.constant 12 : i32
    %65 = vector.broadcast %c12_i32_28 : i32 to vector<8x12xi32>
    %66 = arith.select %64, %36, %65 : vector<8x12xi1>, vector<8x12xi32>
    %cst_29 = arith.constant dense<2147483647> : vector<8xi32>
    %67 = vector.multi_reduction <minsi>, %66, %cst_29 [1] : vector<8x12xi32> to vector<8xi32>
    %68 = vector.shape_cast %67 : vector<8xi32> to vector<8x1xi32>
    %69 = vector.broadcast %68 : vector<8x1xi32> to vector<8x12xi32>
    %70 = arith.cmpi eq, %36, %69 : vector<8x12xi32>
    %cst_30 = arith.constant 0xFF800000 : f32
    %71 = vector.broadcast %cst_30 : f32 to vector<8x12xf32>
    %72 = arith.select %70, %71, %60 : vector<8x12xi1>, vector<8x12xf32>
    %cst_31 = arith.constant dense<0xFF800000> : vector<8xf32>
    %73 = vector.multi_reduction <maximumf>, %72, %cst_31 [1] : vector<8x12xf32> to vector<8xf32>
    %74 = vector.shape_cast %73 : vector<8xf32> to vector<8x1xf32>
    %75 = tpu.concatenate %38, %50, %62, %74 in 1 : vector<8x1xf32>, vector<8x1xf32>, vector<8x1xf32>, vector<8x1xf32> -> vector<8x4xf32>
    %c0_32 = arith.constant 0 : index
    %c0_33 = arith.constant 0 : index
    %76 = vector.load %arg8[%c0_32, %c0_33] : memref<8x4xf32, #tpu.memory_space<vmem>>, vector<8x4xf32>
    tpu.vector_store %arg8[%c0_32, %c0_33], %75 {strides = array<i32>} : memref<8x4xf32, #tpu.memory_space<vmem>>, vector<8x4xf32>,
    %c0_i32_34 = arith.constant 0 : i32
    %77 = arith.cmpi eq, %arg1, %c0_i32_34 : i32
    %78 = arith.extui %77 : i1 to i32
    %c0_i32_35 = arith.constant 0 : i32
    %79 = arith.cmpi ne, %78, %c0_i32_35 : i32
    scf.if %79 {
      %c0_36 = arith.constant 0 : index
      %c0_37 = arith.constant 0 : index
      %80 = vector.load %arg7[%c0_36, %c0_37] : memref<8x2xf32, #tpu.memory_space<vmem>>, vector<8x2xf32>
      %cst_38 = arith.constant 2.000000e+00 : f32
      %81 = vector.broadcast %cst_38 : f32 to vector<8x2xf32>
      %82 = arith.mulf %80, %81 : vector<8x2xf32>
      %c0_39 = arith.constant 0 : index
      %c0_40 = arith.constant 0 : index
      %83 = vector.load %arg8[%c0_39, %c0_40] : memref<8x4xf32, #tpu.memory_space<vmem>>, vector<8x4xf32>
      %cst_41 = arith.constant 2.000000e+00 : f32
      %84 = vector.broadcast %cst_41 : f32 to vector<8x4xf32>
      %85 = arith.mulf %83, %84 : vector<8x4xf32>
      %cst_42 = arith.constant 0x7F800000 : f32
      %86 = vector.broadcast %cst_42 : f32 to vector<8x2xf32>
      %87 = arith.cmpf oeq, %82, %86 : vector<8x2xf32>
      %cst_43 = arith.constant 0xFF800000 : f32
      %88 = vector.broadcast %cst_43 : f32 to vector<8x2xf32>
      %89 = arith.select %87, %88, %82 : vector<8x2xi1>, vector<8x2xf32>
      %cst_44 = arith.constant dense<0xFF800000> : vector<8xf32>
      %90 = vector.multi_reduction <maximumf>, %85, %cst_44 [1] : vector<8x4xf32> to vector<8xf32>
      %91 = vector.shape_cast %90 : vector<8xf32> to vector<8x1xf32>
      %92 = tpu.weird %91 : vector<8x1xf32> -> vector<8x1xi1>
      %cst_45 = arith.constant dense<true> : vector<8x1xi1>
      %93 = arith.xori %92, %cst_45 : vector<8x1xi1>
      %cst_46 = arith.constant 0.000000e+00 : f32
      %94 = vector.broadcast %cst_46 : f32 to vector<8x1xf32>
      %95 = arith.select %93, %91, %94 : vector<8x1xi1>, vector<8x1xf32>
      %96 = vector.broadcast %95 : vector<8x1xf32> to vector<8x4xf32>
      %97 = arith.subf %85, %96 : vector<8x4xf32>
      %98 = math.exp %97 : vector<8x4xf32>
      %cst_47 = arith.constant dense<0.000000e+00> : vector<8xf32>
      %99 = vector.multi_reduction <add>, %98, %cst_47 [1] : vector<8x4xf32> to vector<8xf32>
      %100 = vector.shape_cast %99 : vector<8xf32> to vector<8x1xf32>
      %101 = vector.broadcast %95 : vector<8x1xf32> to vector<8x2xf32>
      %102 = arith.maximumf %89, %101 : vector<8x2xf32>
      %103 = arith.subf %89, %102 : vector<8x2xf32>
      %104 = math.exp %103 : vector<8x2xf32>
      %105 = vector.broadcast %95 : vector<8x1xf32> to vector<8x2xf32>
      %106 = arith.subf %105, %102 : vector<8x2xf32>
      %107 = math.exp %106 : vector<8x2xf32>
      %108 = vector.broadcast %100 : vector<8x1xf32> to vector<8x2xf32>
      %109 = arith.mulf %108, %107 : vector<8x2xf32>
      %110 = arith.addf %104, %109 : vector<8x2xf32>
      %111 = math.log %110 : vector<8x2xf32>
      %112 = arith.addf %102, %111 : vector<8x2xf32>
      %113 = arith.subf %112, %89 : vector<8x2xf32>
      %114 = arith.cmpf one, %113, %113 : vector<8x2xf32>
      %115 = math.absf %113 : vector<8x2xf32>
      %cst_48 = arith.constant 0x7F800000 : f32
      %116 = vector.broadcast %cst_48 : f32 to vector<8x2xf32>
      %117 = arith.cmpf oeq, %115, %116 : vector<8x2xf32>
      %118 = arith.ori %114, %117 : vector<8x2xi1>
      %cst_49 = arith.constant 0.000000e+00 : f32
      %119 = vector.broadcast %cst_49 : f32 to vector<8x2xf32>
      %120 = arith.select %118, %119, %113 : vector<8x2xi1>, vector<8x2xf32>
      %cst_50 = arith.constant dense<0.000000e+00> : vector<8xf32>
      %121 = vector.multi_reduction <add>, %120, %cst_50 [1] : vector<8x2xf32> to vector<8xf32>
      %122 = vector.shape_cast %121 : vector<8xf32> to vector<8x1xf32>
      %cst_51 = arith.constant 5.000000e-01 : f32
      %123 = vector.broadcast %cst_51 : f32 to vector<8x1xf32>
      %124 = arith.mulf %122, %123 : vector<8x1xf32>
      %c0_52 = arith.constant 0 : index
      %c0_53 = arith.constant 0 : index
      %125 = vector.load %arg6[%c0_52, %c0_53] : memref<8x1xf32, #tpu.memory_space<vmem>>, vector<8x1xf32>
      tpu.vector_store %arg6[%c0_52, %c0_53], %124 {strides = array<i32>} : memref<8x1xf32, #tpu.memory_space<vmem>>, vector<8x1xf32>,
    } else {
    }
    return
  }
  func.func @transform_0(%arg0: i32, %arg1: i32) -> (i32, i32) {
    %c0_i32 = arith.constant 0 : i32
    %c0_i32_0 = arith.constant 0 : i32
    return %arg0, %c0_i32 : i32, i32
  }
  func.func @transform_1(%arg0: i32, %arg1: i32) -> (i32, i32) {
    %c0_i32 = arith.constant 0 : i32
    %c0_i32_0 = arith.constant 0 : i32
    return %arg1, %c0_i32 : i32, i32
  }
  func.func @transform_2(%arg0: i32, %arg1: i32) -> (i32, i32) {
    %c0_i32 = arith.constant 0 : i32
    %c0_i32_0 = arith.constant 0 : i32
    return %arg0, %c0_i32 : i32, i32
  }
  func.func @transform_3(%arg0: i32, %arg1: i32) -> (i32, i32) {
    %c0_i32 = arith.constant 0 : i32
    %c0_i32_0 = arith.constant 0 : i32
    return %c0_i32, %arg1 : i32, i32
  }
  func.func @transform_4(%arg0: i32, %arg1: i32) -> (i32, i32) {
    %c0_i32 = arith.constant 0 : i32
    %c0_i32_0 = arith.constant 0 : i32
    return %arg0, %c0_i32 : i32, i32
  }
}

</mosaic_0001>

<bundles_post_ra>
// kernel: tpu_custom_call.1
= control target key start
LH: loop header
LB: loop body
LE: loop exit
PB: predicated region body
PF: predicated region fallthrough
CT: control target
= control target key end

     0   :  { %vm28_vm0 = vcmask 261120   ;;  %v242_v1 = vmov 0   ;;  %vm24_vm1 = vcmask 31744   ;;  %v243_v5 = vmov -inf   ;;  %s329_s1 = inlined_call_operand.vmem [shape: bf16[8,32], index: 1, kind: input, shape index: {}]   ;;  %s330_s2 = inlined_call_operand.vmem [shape: s32[8,1], index: 2, kind: input, shape index: {}]   ;;  %s331_s3 = inlined_call_operand.vmem [shape: s32[1,8], index: 3, kind: input, shape index: {}]   ;;  %s332_s0 = inlined_call_operand.vmem [shape: bf16[8,32], index: 0, kind: input, shape index: {}]   ;;  %s333_s4 = inlined_call_operand.vmem [shape: f32[8,1], index: 4, kind: output, shape index: {}]  }
   0x1   :  { %v27_v0 = vld [vmem:[%s329_s1] sm:$0xf]  ;;  %232 = vset.pattern.permute.xlu0 %v242_v1  ;;  %25 = vst.msk [vmem:[#allocation3] sm:$0xff] %vm24_vm1, %v243_v5  ;;  %vm102_vm3 = vcmask 97280   ;;  %v64_v16 = vlaneseq  ;;  %vm22_vm9 = vcmask 15360   ;;  %v246_v43 = vmov inf  }
   0x2   :  { %v48_v2 = vld [vmem:[%s330_s2] sm:$0xff]  ;;  %v33_v3 = vsel %vm28_vm0, %v27_v0, 0  ;;  %s244_s2 = smov 4   ;;  %23 = vst.msk [vmem:[#allocation2] sm:$0xff] %vm22_vm9, %v246_v43  ;;  %vm66_vm12 = vcmask 80896  }
   0x3   :  { %51 = vperm.xlu0 %232, %v48_v2   ;;  %42 = vmatpush.bf16.xpose.msra.mxu0 %v33_v3  ;;  %v26_v4 = vld [vmem:[%s332_s0] sm:$0xf]  ;;  %v288_v17 = vand.u32 127, %v64_v16  ;;  %s245_s0 = smov 2  }
   0x4   :  { %v233_v6 = vld [vmem:[%s331_s3] ss:$0 sm:$0xff] }
   0x8   :  { %v95_v12 = vld [vmem:[#allocation3] sm:$0xff] }
   0x9   :  { %v57_v56 = vld [vmem:[#allocation2] sm:$0xff] }
   0xa   :  { %225 = vmatmul.msk.bf16.vlgmr.msra.gmra.mxu0 %vm28_vm0, %v26_v4 }
  0x75   :  { %v52_v7 = vpop.permute.xlu0 %51 }
  0x76   :  { %vm54_vm2 = vcmp.eq.s32.totalorder %v52_v7, %v233_v6 }
  0x87   :  { %v44_v8 = vpop.f32.mrf.mxu0 }
  0x88   :  { %v56_v9 = vsel %vm54_vm2, -inf, %v44_v8  ;;  %v55_v10 = vsel %vm54_vm2, %v44_v8, inf  ;;  %vm92_vm2 = vcmask 7168  }
  0x89   :  { %97 = vrot.lane.b32.xlu0 %v56_v9, %s244_s2 }
  0x8f   :  { %v46_v11 = vpop.f32.mrf.mxu0 }
  0xfb   :  { %v98_v13 = vpop.permute.xlu0 %97 }
  0xfc   :  { %v101_v14 = vsel %vm24_vm1, %v95_v12, %v98_v13 }
  0xfd   :  { %v103_v15 = vsel %vm102_vm3, %v101_v14, -inf }
  0xfe   :  { %104 = vmax.xlane.f32.xlu1 %v103_v15 }
 0x171   :  { %v290_v18 = vpop.xlane.xlu1 %104 }
 0x172   :  { %vm106_vm4 = vcmp.eq.f32.partialorder %v101_v14, %v290_v18 }
 0x173   :  { %v107_v19 = vsel %vm106_vm4, %v288_v17, 12  ;;  %vm174_vm4 = vcmask 23552  }
 0x174   :  { %v108_v20 = vsel %vm102_vm3, %v107_v19, 2147483647 }
 0x175   :  { %v110_v21 = vshra.s32 %v108_v20, 16  ;;  %v109_v23 = vand.u32 65535, %v108_v20 }
 0x177   :  { %v112_v22 = vcvt.s32.f32 %v110_v21  ;;  %v111_v25 = vcvt.s32.f32 %v109_v23 }
 0x179   :  { %113 = vmin.xlane.f32.xlu1 %v112_v22 }
 0x1ec   :  { %v114_v24 = vpop.xlane.xlu1 %113 }
 0x1ed   :  { %vm115_vm5 = vcmp.eq.f32.partialorder %v112_v22, %v114_v24  ;;  %v120_v27 = vcvt.f32.s32 %v114_v24 }
 0x1ee   :  { %v116_v26 = vsel %vm115_vm5, %v111_v25, inf }
 0x1ef   :  { %117 = vmin.xlane.f32.xlu2 %v116_v26  ;;  %v121_v29 = vshll.u32 %v120_v27, 16 }
 0x262   :  { %v118_v28 = vpop.xlane.xlu2 %117 }
 0x263   :  { %v119_v30 = vcvt.f32.s32 %v118_v28 }
 0x265   :  { %v122_v31 = vadd.s32 %v121_v29, %v119_v30 }
 0x267   :  { %vm123_vm6 = vcmp.eq.s32.totalorder %v288_v17, %v122_v31 }
 0x268   :  { %v124_v32 = vsel %vm123_vm6, -inf, %v101_v14  ;;  %vm247_vm6 = vmmov 1  }
 0x269   :  { %v125_v33 = vsel %vm102_vm3, %v124_v32, -inf }
 0x26a   :  { %126 = vmax.xlane.f32.xlu2 %v125_v33 }
 0x2dd   :  { %v297_v34 = vpop.xlane.xlu2 %126 }
 0x2de   :  { %vm128_vm7 = vcmp.eq.f32.partialorder %v124_v32, %v297_v34  ;;  %v172_v16 = vsel %vm92_vm2, %v290_v18, %v297_v34 }
 0x2df   :  { %v129_v35 = vsel %vm128_vm7, %v288_v17, 12 }
 0x2e0   :  { %v130_v36 = vsel %vm102_vm3, %v129_v35, 2147483647 }
 0x2e1   :  { %v132_v37 = vshra.s32 %v130_v36, 16  ;;  %v131_v39 = vand.u32 65535, %v130_v36 }
 0x2e3   :  { %v134_v38 = vcvt.s32.f32 %v132_v37  ;;  %v133_v41 = vcvt.s32.f32 %v131_v39 }
 0x2e5   :  { %135 = vmin.xlane.f32.xlu0 %v134_v38 }
 0x358   :  { %v136_v40 = vpop.xlane.xlu0 %135 }
 0x359   :  { %vm137_vm8 = vcmp.eq.f32.partialorder %v134_v38, %v136_v40  ;;  %v142_v44 = vcvt.f32.s32 %v136_v40 }
 0x35a   :  { %v138_v42 = vsel %vm137_vm8, %v133_v41, inf }
 0x35b   :  { %139 = vmin.xlane.f32.xlu1 %v138_v42  ;;  %v143_v46 = vshll.u32 %v142_v44, 16 }
 0x374   :  { %59 = vrot.lane.b32.xlu1 %v55_v10, %s245_s0 }
 0x3ce   :  { %v140_v45 = vpop.xlane.xlu1 %139 }
 0x3cf   :  { %v141_v47 = vcvt.f32.s32 %v140_v45 }
 0x3d1   :  { %v144_v48 = vadd.s32 %v143_v46, %v141_v47 }
 0x3d3   :  { %vm145_vm10 = vcmp.eq.s32.totalorder %v288_v17, %v144_v48 }
 0x3d4   :  { %v146_v49 = vsel %vm145_vm10, -inf, %v124_v32 }
 0x3d5   :  { %v147_v50 = vsel %vm102_vm3, %v146_v49, -inf }
 0x3d6   :  { %148 = vmax.xlane.f32.xlu2 %v147_v50 }
 0x3e6   :  { %v60_v57 = vpop.permute.xlu1 %59 }
 0x3e7   :  { %v63_v58 = vsel %vm22_vm9, %v57_v56, %v60_v57 }
 0x3e8   :  { %v67_v59 = vsel %vm66_vm12, %v63_v58, inf }
 0x449   :  { %v149_v51 = vpop.xlane.xlu2 %148 }
 0x44a   :  { %vm150_vm11 = vcmp.eq.f32.partialorder %v146_v49, %v149_v51  ;;  %v173_v19 = vsel %vm22_vm9, %v172_v16, %v149_v51 }
 0x44b   :  { %v151_v52 = vsel %vm150_vm11, %v288_v17, 12 }
 0x44c   :  { %v152_v53 = vsel %vm102_vm3, %v151_v52, 2147483647 }
 0x44d   :  { %v154_v54 = vshra.s32 %v152_v53, 16  ;;  %v153_v60 = vand.u32 65535, %v152_v53 }
 0x44f   :  { %v156_v55 = vcvt.s32.f32 %v154_v54  ;;  %v155_v62 = vcvt.s32.f32 %v153_v60 }
 0x451   :  { %157 = vmin.xlane.f32.xlu2 %v156_v55 }
 0x459   :  { %68 = vmin.xlane.f32.xlu2 %v67_v59 }
 0x4c4   :  { %v158_v61 = vpop.xlane.xlu2 %157 }
 0x4c5   :  { %vm159_vm13 = vcmp.eq.f32.partialorder %v156_v55, %v158_v61  ;;  %v164_v5 = vcvt.f32.s32 %v158_v61 }
 0x4c6   :  { %v160_v63 = vsel %vm159_vm13, %v155_v62, inf }
 0x4c7   :  { %161 = vmin.xlane.f32.xlu2 %v160_v63  ;;  %v165_v7 = vshll.u32 %v164_v5, 16 }
 0x4cc   :  { %v69_v0 = vpop.xlane.xlu2 %68 }
 0x4cd   :  { %vm70_vm14 = vcmp.eq.f32.partialorder %v63_v58, %v69_v0 }
 0x4ce   :  { %v71_v1 = vsel %vm70_vm14, %v288_v17, 10 }
 0x4cf   :  { %v72_v2 = vsel %vm66_vm12, %v71_v1, 2147483647 }
 0x4d0   :  { %v74_v3 = vshra.s32 %v72_v2, 16  ;;  %v73_v12 = vand.u32 65535, %v72_v2 }
 0x4d2   :  { %v76_v4 = vcvt.s32.f32 %v74_v3  ;;  %v75_v14 = vcvt.s32.f32 %v73_v12 }
 0x4d4   :  { %77 = vmin.xlane.f32.xlu2 %v76_v4 }
 0x53a   :  { %v162_v6 = vpop.xlane.xlu2 %161 }
 0x53b   :  { %v163_v8 = vcvt.f32.s32 %v162_v6 }
 0x53d   :  { %v166_v9 = vadd.s32 %v165_v7, %v163_v8 }
 0x53f   :  { %vm167_vm15 = vcmp.eq.s32.totalorder %v288_v17, %v166_v9 }
 0x540   :  { %v168_v10 = vsel %vm167_vm15, -inf, %v146_v49 }
 0x541   :  { %v169_v11 = vsel %vm102_vm3, %v168_v10, -inf }
 0x542   :  { %170 = vmax.xlane.f32.xlu1 %v169_v11 }
 0x547   :  { %v78_v13 = vpop.xlane.xlu2 %77 }
 0x548   :  { %vm79_vm0 = vcmp.eq.f32.partialorder %v76_v4, %v78_v13  ;;  %v84_v22 = vcvt.f32.s32 %v78_v13 }
 0x549   :  { %v80_v15 = vsel %vm79_vm0, %v75_v14, inf }
 0x54a   :  { %81 = vmin.xlane.f32.xlu2 %v80_v15  ;;  %v85_v24 = vshll.u32 %v84_v22, 16 }
 0x5b5   :  { %v171_v20 = vpop.xlane.xlu1 %170 }
 0x5b6   :  { %v175_v21 = vsel %vm174_vm4, %v173_v19, %v171_v20 }
 0x5b7   :  { %176 = vst.msk [vmem:[#allocation3] sm:$0xff] %vm24_vm1, %v175_v21 }
 0x5bd   :  { %v82_v23 = vpop.xlane.xlu2 %81 }
 0x5be   :  { %v83_v25 = vcvt.f32.s32 %v82_v23  ;;  %v182_v26 = vld [vmem:[#allocation3] sm:$0xff] }
 0x5bf   :  { %v183_v27 = vmul.f32 2.0, %v182_v26 }
 0x5c0   :  { %v86_v28 = vadd.s32 %v85_v24, %v83_v25 }
 0x5c1   :  { %v186_v29 = vsel %vm24_vm1, %v183_v27, -inf }
 0x5c2   :  { %187 = vmax.xlane.f32.xlu0 %v186_v29  ;;  %vm87_vm3 = vcmp.eq.s32.totalorder %v288_v17, %v86_v28 }
 0x5c3   :  { %v88_v30 = vsel %vm87_vm3, inf, %v63_v58 }
 0x5c4   :  { %v89_v18 = vsel %vm66_vm12, %v88_v30, inf }
 0x5c5   :  { %90 = vmin.xlane.f32.xlu2 %v89_v18 }
 0x635   :  { %v188_v31 = vpop.xlane.xlu0 %187 }
 0x636   :  { %vm189_vm5 = vweird.f32 %v188_v31 }
 0x637   :  { %vm190_vm7 = vmxor %vm189_vm5, %vm247_vm6 }
 0x638   :  { %v191_v32 = vsel %vm190_vm7, %v188_v31, 0.0  ;;  %v91_v33 = vpop.xlane.xlu2 %90 }
 0x639   :  { %v192_v34 = vsub.f32 %v183_v27, %v191_v32  ;;  %v93_v35 = vsel %vm92_vm2, %v69_v0, %v91_v33 }
 0x63a   :  { %94 = vst.msk [vmem:[#allocation2] sm:$0xff] %vm22_vm9, %v93_v35 }
 0x63b   :  { %v193_v36 = vmul.f32 1.442695, %v192_v34 }
 0x63d   :  { %234 = vpow2.f32 %v193_v36 }
 0x641   :  { %v180_v38 = vld [vmem:[#allocation2] sm:$0xff] }
 0x642   :  { %v181_v39 = vmul.f32 2.0, %v180_v38 }
 0x643   :  { %v235_v37 = vpop.eup %234 }
 0x644   :  { %v195_v17 = vsel %vm24_vm1, %v235_v37, 0.0  ;;  %vm184_vm8 = vcmp.eq.f32.partialorder %v181_v39, inf }
 0x645   :  { %196 = vadd.xlane.f32.xlu0 %v195_v17  ;;  %v185_v40 = vsel %vm184_vm8, -inf, %v181_v39 }
 0x646   :  { %v198_v41 = vmax.f32 %v185_v40, %v191_v32 }
 0x648   :  { %v202_v42 = vsub.f32 %v191_v32, %v198_v41  ;;  %v199_v43 = vsub.f32 %v185_v40, %v198_v41 }
 0x64a   :  { %v203_v44 = vmul.f32 1.442695, %v202_v42  ;;  %v200_v45 = vmul.f32 1.442695, %v199_v43 }
 0x64c   :  { %236 = vpow2.f32 %v203_v44 }
 0x64d   :  { %238 = vpow2.f32 %v200_v45 }
 0x652   :  { %v237_v46 = vpop.eup %236 }
 0x653   :  { %v239_v49 = vpop.eup %238 }
 0x6b8   :  { %v197_v47 = vpop.xlane.xlu0 %196 }
 0x6b9   :  { %v205_v48 = vmul.f32 %v237_v46, %v197_v47 }
 0x6bb   :  { %v206_v50 = vadd.f32 %v239_v49, %v205_v48 }
 0x6bd   :  { %240 = vlog2.f32 %v206_v50 }
 0x6c3   :  { %v241_v51 = vpop.eup %240 }
 0x6c4   :  { %v208_v52 = vmul.f32 0.6931472, %v241_v51 }
 0x6c6   :  { %v209_v53 = vadd.f32 %v208_v52, %v198_v41 }
 0x6c8   :  { %v210_v54 = vsub.f32 %v209_v53, %v185_v40 }
 0x6ca   :  { %v212_v55 = vand.u32 2147483647, %v210_v54  ;;  %vm211_vm1 = vcmp.ne.f32.partialorder %v210_v54, %v210_v54 }
 0x6cc   :  { %vm213_vm10 = vcmp.eq.f32.partialorder %v212_v55, inf }
 0x6cd   :  { %vm214_vm11 = vmor %vm211_vm1, %vm213_vm10 }
 0x6ce   :  { %v215_v56 = vsel %vm214_vm11, 0.0, %v210_v54 }
 0x6cf   :  { %v216_v57 = vsel %vm22_vm9, %v215_v56, 0.0 }
 0x6d0   :  { %217 = vadd.xlane.f32.xlu2 %v216_v57 }
 0x743   :  { %v218_v58 = vpop.xlane.xlu2 %217 }
 0x744   :  { %v219_v59 = vmul.f32 0.5, %v218_v58 }
 0x746   :  { %220 = vst.msk [vmem:[%s333_s4] sm:$0xff] %vm92_vm2, %v219_v59 }

</bundles_post_ra>
